<compile_context>
chip_gen: v7x
topology: tpu7x:2x2x1
jax: 0.10.0
libtpu: 0.0.40
codegen_flags: <defaults>
</compile_context>

<pallas_src>
import functools

import jax
import jax.numpy as jnp
from jax.experimental import pallas as pl
from jax.experimental.pallas import tpu as pltpu

HIDDEN = 256
TILE_M = 1024   # batch-tile upper bound (rows per grid step)
LANE = 128


def _round_up(x, m):
    return ((x + m - 1) // m) * m


def _td3_critic_kernel(sa_ref,
                       w1_ref, b14_ref,
                       w2_ref, b2_ref,
                       w5_ref, b5_ref,
                       w3r_ref, w6r_ref, b36_ref,
                       q_ref):
    # ---- Layer 1 of BOTH Q branches, one lane-dense matmul: (tm, 128) @ (128, 512) ----
    sa = sa_ref[...].astype(jnp.bfloat16)
    hg = jnp.dot(sa, w1_ref[...], preferred_element_type=jnp.float32) + b14_ref[...]
    hg = jnp.maximum(hg, 0.0)

    # ---- Layer 2, per branch (keeps FLOPs at 2 x 256^2, not 512^2) ----
    h = hg[:, :HIDDEN].astype(jnp.bfloat16)
    g = hg[:, HIDDEN:].astype(jnp.bfloat16)
    h2 = jnp.maximum(
        jnp.dot(h, w2_ref[...], preferred_element_type=jnp.float32) + b2_ref[...], 0.0)
    g2 = jnp.maximum(
        jnp.dot(g, w5_ref[...], preferred_element_type=jnp.float32) + b5_ref[...], 0.0)

    # ---- Layer 3: N=1 heads as VPU multiply + XLU lane reduction (no concat, no MXU) ----
    q1 = jnp.sum(h2 * w3r_ref[...], axis=-1, keepdims=True)   # (tm, 1) f32
    q2 = jnp.sum(g2 * w6r_ref[...], axis=-1, keepdims=True)   # (tm, 1) f32
    q = jnp.concatenate([q1, q2], axis=-1) + b36_ref[...]     # (tm, 2)
    q_ref[...] = q.astype(q_ref.dtype)


def td3_critic_forward(state, action, packed, *, tile_m=TILE_M):
    """Equivalent of TD3Critic.forward(state, action) -> (q1, q2)."""
    B, state_dim = state.shape
    action_dim = action.shape[1]
    in_dim = state_dim + action_dim
    in_pad = _round_up(in_dim, LANE)

    # Lane-dense layer-1 input: [state | action | zeros] -> (B, in_pad) f32.
    sa = jnp.concatenate([state, action], axis=1)
    if in_pad != in_dim:
        sa = jnp.pad(sa, ((0, 0), (0, in_pad - in_dim)))

    # Minimal-padding batch tiling: block rows only need to be a multiple of 8.
    n_tiles = pl.cdiv(B, min(tile_m, _round_up(B, 8)))
    tm = _round_up(pl.cdiv(B, n_tiles), 8)
    b_pad = n_tiles * tm
    if b_pad != B:
        sa = jnp.pad(sa, ((0, b_pad - B), (0, 0)))

    def resident(shape):
        # Full-shape block, constant index_map: fetched once, stays VMEM-resident.
        return pl.BlockSpec(shape, lambda i: (0, 0))

    q = pl.pallas_call(
        _td3_critic_kernel,
        out_shape=jax.ShapeDtypeStruct((b_pad, 2), jnp.float32),
        grid=(n_tiles,),
        in_specs=[
            pl.BlockSpec((tm, in_pad), lambda i: (i, 0)),
            resident(packed["w1"].shape),
            resident(packed["b14"].shape),
            resident(packed["w2"].shape),
            resident(packed["b2"].shape),
            resident(packed["w5"].shape),
            resident(packed["b5"].shape),
            resident(packed["w3r"].shape),
            resident(packed["w6r"].shape),
            resident(packed["b36"].shape),
        ],
        out_specs=pl.BlockSpec((tm, 2), lambda i: (i, 0)),
        compiler_params=pltpu.CompilerParams(
            dimension_semantics=("parallel",),
            vmem_limit_bytes=32 * 1024 * 1024),
    )(sa,
      packed["w1"], packed["b14"],
      packed["w2"], packed["b2"],
      packed["w5"], packed["b5"],
      packed["w3r"], packed["w6r"], packed["b36"])

    return q[:B, 0:1], q[:B, 1:2]


def init_td3_critic_params(key, state_dim, action_dim):
    """Per-layer f32 params mimicking nn.Linear defaults: U(-1/sqrt(fan_in), +1/sqrt(fan_in))."""
    in_dim = state_dim + action_dim
    dims = [
        ("w1", "b1", in_dim, HIDDEN),
        ("w2", "b2", HIDDEN, HIDDEN),
        ("w3", "b3", HIDDEN, 1),
        ("w4", "b4", in_dim, HIDDEN),
        ("w5", "b5", HIDDEN, HIDDEN),
        ("w6", "b6", HIDDEN, 1),
    ]
    params = {}
    keys = jax.random.split(key, 2 * len(dims))
    for i, (wn, bn, fan_in, fan_out) in enumerate(dims):
        bound = 1.0 / jnp.sqrt(jnp.float32(fan_in))
        params[wn] = jax.random.uniform(
            keys[2 * i], (fan_in, fan_out), jnp.float32, -bound, bound)
        params[bn] = jax.random.uniform(
            keys[2 * i + 1], (1, fan_out), jnp.float32, -bound, bound)
    return params


def pack_td3_critic_params(raw, state_dim, action_dim):
    """Pack per-layer params into the fused / lane-dense / bf16 layout the kernel expects."""
    in_dim = state_dim + action_dim
    in_pad = _round_up(in_dim, LANE)
    w14 = jnp.concatenate([raw["w1"], raw["w4"]], axis=1)            # (in_dim, 512)
    w14 = jnp.pad(w14, ((0, in_pad - in_dim), (0, 0)))               # zero K rows -> lane-dense
    return {
        "w1": w14.astype(jnp.bfloat16),                              # (in_pad, 512) bf16
        "b14": jnp.concatenate([raw["b1"], raw["b4"]], axis=1),      # (1, 512) f32
        "w2": raw["w2"].astype(jnp.bfloat16),                        # (256, 256) bf16
        "b2": raw["b2"],                                             # (1, 256) f32
        "w5": raw["w5"].astype(jnp.bfloat16),                        # (256, 256) bf16
        "b5": raw["b5"],                                             # (1, 256) f32
        "w3r": raw["w3"].T,                                          # (1, 256) f32 row
        "w6r": raw["w6"].T,                                          # (1, 256) f32 row
        "b36": jnp.concatenate([raw["b3"], raw["b6"]], axis=1),      # (1, 2) f32
    }


def td3_critic_reference(state, action, raw):
    """Pure-JAX reference matching the kernel's mixed-precision semantics
    (bf16 MXU operands / f32 accumulate for layers 1-2, f32 layer-3 heads)."""
    def dot_bf16(x, w):
        return jnp.dot(x.astype(jnp.bfloat16), w.astype(jnp.bfloat16),
                       preferred_element_type=jnp.float32)
    sa = jnp.concatenate([state, action], axis=1)
    h = jax.nn.relu(dot_bf16(sa, raw["w1"]) + raw["b1"])
    h = jax.nn.relu(dot_bf16(h, raw["w2"]) + raw["b2"])
    q1 = jnp.dot(h, raw["w3"], preferred_element_type=jnp.float32) + raw["b3"]
    g = jax.nn.relu(dot_bf16(sa, raw["w4"]) + raw["b4"])
    g = jax.nn.relu(dot_bf16(g, raw["w5"]) + raw["b5"])
    q2 = jnp.dot(g, raw["w6"], preferred_element_type=jnp.float32) + raw["b6"]
    return q1, q2


if __name__ == "__main__":
    key = jax.random.PRNGKey(0)
    k_params, k_data = jax.random.split(key)

    state_dim = 17   # e.g. MuJoCo HalfCheetah-style observation
    action_dim = 6

    raw = init_td3_critic_params(k_params, state_dim, action_dim)
    packed = pack_td3_critic_params(raw, state_dim, action_dim)

    fwd = jax.jit(functools.partial(td3_critic_forward, tile_m=TILE_M))

    # batch=8: single tiny block; batch=300: single 304-row block (minimal padding);
    # batch=2304: exercises the multi-tile grid path (3 tiles of 768 rows).
    for batch in (8, 300, 2304):
        ks, ka = jax.random.split(jax.random.fold_in(k_data, batch))
        state = jax.random.normal(ks, (batch, state_dim), jnp.float32)
        action = jax.random.normal(ka, (batch, action_dim), jnp.float32)

        q1, q2 = fwd(state, action, packed)
        jax.block_until_ready((q1, q2))

        q1_ref, q2_ref = td3_critic_reference(state, action, raw)
        assert q1.shape == (batch, 1) and q2.shape == (batch, 1)
        assert jnp.allclose(q1, q1_ref, atol=5e-3, rtol=5e-3), \
            float(jnp.max(jnp.abs(q1 - q1_ref)))
        assert jnp.allclose(q2, q2_ref, atol=5e-3, rtol=5e-3), \
            float(jnp.max(jnp.abs(q2 - q2_ref)))

    print("KERNEL_OK")
</pallas_src>

<mosaic_0001>
module attributes {stable_mosaic.version = 11 : i64} {
  func.func @_td3_critic_kernel(%arg0: i32, %arg1: memref<8x128xf32, #tpu.memory_space<vmem>>, %arg2: memref<128x512xbf16, #tpu.memory_space<vmem>>, %arg3: memref<1x512xf32, #tpu.memory_space<vmem>>, %arg4: memref<256x256xbf16, #tpu.memory_space<vmem>>, %arg5: memref<1x256xf32, #tpu.memory_space<vmem>>, %arg6: memref<256x256xbf16, #tpu.memory_space<vmem>>, %arg7: memref<1x256xf32, #tpu.memory_space<vmem>>, %arg8: memref<1x256xf32, #tpu.memory_space<vmem>>, %arg9: memref<1x256xf32, #tpu.memory_space<vmem>>, %arg10: memref<1x2xf32, #tpu.memory_space<vmem>>, %arg11: memref<8x2xf32, #tpu.memory_space<vmem>>) attributes {dimension_semantics = [#tpu.dimension_semantics<parallel>], iteration_bounds = array<i64: 1>, scalar_prefetch = 0 : i64, scratch_operands = 0 : i64, tpu.core_type = #tpu.core_type<tc>, window_params = [{transform_indices = @transform_0, window_bounds = array<i64: 8, 128>}, {pipeline_mode = #tpu.pipeline_mode<synchronous>, transform_indices = @transform_1, window_bounds = array<i64: 128, 512>}, {pipeline_mode = #tpu.pipeline_mode<synchronous>, transform_indices = @transform_2, window_bounds = array<i64: 1, 512>}, {pipeline_mode = #tpu.pipeline_mode<synchronous>, transform_indices = @transform_3, window_bounds = array<i64: 256, 256>}, {pipeline_mode = #tpu.pipeline_mode<synchronous>, transform_indices = @transform_4, window_bounds = array<i64: 1, 256>}, {pipeline_mode = #tpu.pipeline_mode<synchronous>, transform_indices = @transform_5, window_bounds = array<i64: 256, 256>}, {pipeline_mode = #tpu.pipeline_mode<synchronous>, transform_indices = @transform_6, window_bounds = array<i64: 1, 256>}, {pipeline_mode = #tpu.pipeline_mode<synchronous>, transform_indices = @transform_7, window_bounds = array<i64: 1, 256>}, {pipeline_mode = #tpu.pipeline_mode<synchronous>, transform_indices = @transform_8, window_bounds = array<i64: 1, 256>}, {pipeline_mode = #tpu.pipeline_mode<synchronous>, transform_indices = @transform_9, window_bounds = array<i64: 1, 2>}, {transform_indices = @transform_10, window_bounds = array<i64: 8, 2>}]} {
    %c0 = arith.constant 0 : index
    %c0_0 = arith.constant 0 : index
    %0 = vector.load %arg1[%c0, %c0_0] : memref<8x128xf32, #tpu.memory_space<vmem>>, vector<8x128xf32>
    %1 = arith.truncf %0 : vector<8x128xf32> to vector<8x128xbf16>
    %c0_1 = arith.constant 0 : index
    %c0_2 = arith.constant 0 : index
    %2 = vector.load %arg2[%c0_1, %c0_2] : memref<128x512xbf16, #tpu.memory_space<vmem>>, vector<128x512xbf16>
    %cst = arith.constant dense<0.000000e+00> : vector<8x512xf32>
    %3 = tpu.matmul %1, %2, %cst {dimension_numbers = #tpu.dot_dimension_numbers<[1], [0], [0], [1], [0, 0, 1, 1], [], []>} : vector<8x128xbf16>, vector<128x512xbf16>, vector<8x512xf32> -> vector<8x512xf32>
    %c0_3 = arith.constant 0 : index
    %c0_4 = arith.constant 0 : index
    %4 = vector.load %arg3[%c0_3, %c0_4] : memref<1x512xf32, #tpu.memory_space<vmem>>, vector<1x512xf32>
    %5 = vector.broadcast %4 : vector<1x512xf32> to vector<8x512xf32>
    %6 = arith.addf %3, %5 : vector<8x512xf32>
    %cst_5 = arith.constant 0.000000e+00 : f32
    %7 = vector.broadcast %cst_5 : f32 to vector<8x512xf32>
    %8 = arith.maximumf %6, %7 : vector<8x512xf32>
    %9 = vector.extract_strided_slice %8 {offsets = [0, 0], sizes = [8, 256], strides = [1, 1]} : vector<8x512xf32> to vector<8x256xf32>
    %10 = arith.truncf %9 : vector<8x256xf32> to vector<8x256xbf16>
    %11 = vector.extract_strided_slice %8 {offsets = [0, 256], sizes = [8, 256], strides = [1, 1]} : vector<8x512xf32> to vector<8x256xf32>
    %12 = arith.truncf %11 : vector<8x256xf32> to vector<8x256xbf16>
    %c0_6 = arith.constant 0 : index
    %c0_7 = arith.constant 0 : index
    %13 = vector.load %arg4[%c0_6, %c0_7] : memref<256x256xbf16, #tpu.memory_space<vmem>>, vector<256x256xbf16>
    %cst_8 = arith.constant dense<0.000000e+00> : vector<8x256xf32>
    %14 = tpu.matmul %10, %13, %cst_8 {dimension_numbers = #tpu.dot_dimension_numbers<[1], [0], [0], [1], [0, 0, 1, 1], [], []>} : vector<8x256xbf16>, vector<256x256xbf16>, vector<8x256xf32> -> vector<8x256xf32>
    %c0_9 = arith.constant 0 : index
    %c0_10 = arith.constant 0 : index
    %15 = vector.load %arg5[%c0_9, %c0_10] : memref<1x256xf32, #tpu.memory_space<vmem>>, vector<1x256xf32>
    %16 = vector.broadcast %15 : vector<1x256xf32> to vector<8x256xf32>
    %17 = arith.addf %14, %16 : vector<8x256xf32>
    %cst_11 = arith.constant 0.000000e+00 : f32
    %18 = vector.broadcast %cst_11 : f32 to vector<8x256xf32>
    %19 = arith.maximumf %17, %18 : vector<8x256xf32>
    %c0_12 = arith.constant 0 : index
    %c0_13 = arith.constant 0 : index
    %20 = vector.load %arg6[%c0_12, %c0_13] : memref<256x256xbf16, #tpu.memory_space<vmem>>, vector<256x256xbf16>
    %cst_14 = arith.constant dense<0.000000e+00> : vector<8x256xf32>
    %21 = tpu.matmul %12, %20, %cst_14 {dimension_numbers = #tpu.dot_dimension_numbers<[1], [0], [0], [1], [0, 0, 1, 1], [], []>} : vector<8x256xbf16>, vector<256x256xbf16>, vector<8x256xf32> -> vector<8x256xf32>
    %c0_15 = arith.constant 0 : index
    %c0_16 = arith.constant 0 : index
    %22 = vector.load %arg7[%c0_15, %c0_16] : memref<1x256xf32, #tpu.memory_space<vmem>>, vector<1x256xf32>
    %23 = vector.broadcast %22 : vector<1x256xf32> to vector<8x256xf32>
    %24 = arith.addf %21, %23 : vector<8x256xf32>
    %cst_17 = arith.constant 0.000000e+00 : f32
    %25 = vector.broadcast %cst_17 : f32 to vector<8x256xf32>
    %26 = arith.maximumf %24, %25 : vector<8x256xf32>
    %c0_18 = arith.constant 0 : index
    %c0_19 = arith.constant 0 : index
    %27 = vector.load %arg8[%c0_18, %c0_19] : memref<1x256xf32, #tpu.memory_space<vmem>>, vector<1x256xf32>
    %28 = vector.broadcast %27 : vector<1x256xf32> to vector<8x256xf32>
    %29 = arith.mulf %19, %28 : vector<8x256xf32>
    %cst_20 = arith.constant dense<0.000000e+00> : vector<8xf32>
    %30 = vector.multi_reduction <add>, %29, %cst_20 [1] : vector<8x256xf32> to vector<8xf32>
    %31 = vector.shape_cast %30 : vector<8xf32> to vector<8x1xf32>
    %c0_21 = arith.constant 0 : index
    %c0_22 = arith.constant 0 : index
    %32 = vector.load %arg9[%c0_21, %c0_22] : memref<1x256xf32, #tpu.memory_space<vmem>>, vector<1x256xf32>
    %33 = vector.broadcast %32 : vector<1x256xf32> to vector<8x256xf32>
    %34 = arith.mulf %26, %33 : vector<8x256xf32>
    %cst_23 = arith.constant dense<0.000000e+00> : vector<8xf32>
    %35 = vector.multi_reduction <add>, %34, %cst_23 [1] : vector<8x256xf32> to vector<8xf32>
    %36 = vector.shape_cast %35 : vector<8xf32> to vector<8x1xf32>
    %37 = tpu.concatenate %31, %36 in 1 : vector<8x1xf32>, vector<8x1xf32> -> vector<8x2xf32>
    %c0_24 = arith.constant 0 : index
    %c0_25 = arith.constant 0 : index
    %38 = vector.load %arg10[%c0_24, %c0_25] : memref<1x2xf32, #tpu.memory_space<vmem>>, vector<1x2xf32>
    %39 = vector.broadcast %38 : vector<1x2xf32> to vector<8x2xf32>
    %40 = arith.addf %37, %39 : vector<8x2xf32>
    %c0_26 = arith.constant 0 : index
    %c0_27 = arith.constant 0 : index
    %41 = vector.load %arg11[%c0_26, %c0_27] : memref<8x2xf32, #tpu.memory_space<vmem>>, vector<8x2xf32>
    tpu.vector_store %arg11[%c0_26, %c0_27], %40 {strides = array<i32>} : memref<8x2xf32, #tpu.memory_space<vmem>>, vector<8x2xf32>,
    return
  }
  func.func @transform_0(%arg0: i32) -> (i32, i32) {
    %c0_i32 = arith.constant 0 : i32
    %c0_i32_0 = arith.constant 0 : i32
    return %arg0, %c0_i32 : i32, i32
  }
  func.func @transform_1(%arg0: i32) -> (i32, i32) {
    %c0_i32 = arith.constant 0 : i32
    %c0_i32_0 = arith.constant 0 : i32
    %c0_i32_1 = arith.constant 0 : i32
    return %c0_i32, %c0_i32_0 : i32, i32
  }
  func.func @transform_2(%arg0: i32) -> (i32, i32) {
    %c0_i32 = arith.constant 0 : i32
    %c0_i32_0 = arith.constant 0 : i32
    %c0_i32_1 = arith.constant 0 : i32
    return %c0_i32, %c0_i32_0 : i32, i32
  }
  func.func @transform_3(%arg0: i32) -> (i32, i32) {
    %c0_i32 = arith.constant 0 : i32
    %c0_i32_0 = arith.constant 0 : i32
    %c0_i32_1 = arith.constant 0 : i32
    return %c0_i32, %c0_i32_0 : i32, i32
  }
  func.func @transform_4(%arg0: i32) -> (i32, i32) {
    %c0_i32 = arith.constant 0 : i32
    %c0_i32_0 = arith.constant 0 : i32
    %c0_i32_1 = arith.constant 0 : i32
    return %c0_i32, %c0_i32_0 : i32, i32
  }
  func.func @transform_5(%arg0: i32) -> (i32, i32) {
    %c0_i32 = arith.constant 0 : i32
    %c0_i32_0 = arith.constant 0 : i32
    %c0_i32_1 = arith.constant 0 : i32
    return %c0_i32, %c0_i32_0 : i32, i32
  }
  func.func @transform_6(%arg0: i32) -> (i32, i32) {
    %c0_i32 = arith.constant 0 : i32
    %c0_i32_0 = arith.constant 0 : i32
    %c0_i32_1 = arith.constant 0 : i32
    return %c0_i32, %c0_i32_0 : i32, i32
  }
  func.func @transform_7(%arg0: i32) -> (i32, i32) {
    %c0_i32 = arith.constant 0 : i32
    %c0_i32_0 = arith.constant 0 : i32
    %c0_i32_1 = arith.constant 0 : i32
    return %c0_i32, %c0_i32_0 : i32, i32
  }
  func.func @transform_8(%arg0: i32) -> (i32, i32) {
    %c0_i32 = arith.constant 0 : i32
    %c0_i32_0 = arith.constant 0 : i32
    %c0_i32_1 = arith.constant 0 : i32
    return %c0_i32, %c0_i32_0 : i32, i32
  }
  func.func @transform_9(%arg0: i32) -> (i32, i32) {
    %c0_i32 = arith.constant 0 : i32
    %c0_i32_0 = arith.constant 0 : i32
    %c0_i32_1 = arith.constant 0 : i32
    return %c0_i32, %c0_i32_0 : i32, i32
  }
  func.func @transform_10(%arg0: i32) -> (i32, i32) {
    %c0_i32 = arith.constant 0 : i32
    %c0_i32_0 = arith.constant 0 : i32
    return %arg0, %c0_i32 : i32, i32
  }
}

</mosaic_0001>

<bundles_post_ra>
// kernel: td3_critic_forward.1
= control target key start
LH: loop header
LB: loop body
LE: loop exit
PB: predicated region body
PF: predicated region fallthrough
CT: control target
= control target key end

     0   :  { %15 = vsyncpa [#allocation3], 0  ;;  %s1384_s0 = inlined_call_operand.vmem [shape: f32[8,128], index: 0, kind: input, shape index: {}]   ;;  %s1385_s1 = inlined_call_operand.hbm [shape: bf16[128,512], index: 1, kind: input, shape index: {}]   ;;  %s1386_s2 = inlined_call_operand.vmem [shape: f32[1,512], index: 2, kind: input, shape index: {}]   ;;  %s1387_s3 = inlined_call_operand.hbm [shape: bf16[256,256], index: 3, kind: input, shape index: {}]   ;;  %s1388_s4 = inlined_call_operand.vmem [shape: f32[1,256], index: 4, kind: input, shape index: {}]   ;;  %s1389_s5 = inlined_call_operand.hbm [shape: bf16[256,256], index: 5, kind: input, shape index: {}]   ;;  %s1390_s6 = inlined_call_operand.vmem [shape: f32[1,256], index: 6, kind: input, shape index: {}]   ;;  %s1391_s7 = inlined_call_operand.vmem [shape: f32[1,256], index: 7, kind: input, shape index: {}]   ;;  %s1392_s8 = inlined_call_operand.vmem [shape: f32[1,256], index: 8, kind: input, shape index: {}]   ;;  %s1393_s9 = inlined_call_operand.vmem [shape: f32[1,2], index: 9, kind: input, shape index: {}]   ;;  %s1394_s10 = inlined_call_operand.vmem [shape: f32[8,2], index: 10, kind: output, shape index: {}]  }
   0x1   :  { %16 = vsyncpa [#allocation5], 0  ;;  %s1248_s13 = smov [#allocation4]   ;;  %s1178_s17 = scalar_lea.hbm %s1387_s3, 4096 }
   0x2   :  { %s38_s14 = sshll.u32 %s1248_s13, 4  ;;  %p1179_p0 = scmp.ne.s32.totalorder %s1387_s3, %s1178_s17  ;;  %s39_s14 = int_to_ptr.vmem [resolvable:$true] %s38_s14 }
   0x3   :  { %p1182_p1 = scmp.lt.u32.totalorder %s1178_s17, %s1387_s3 }
   0x5   :  { %p1184_p2 = pnand %p1182_p1, %p1179_p0 }
   0x7   :  { %1187 = shalt.err (!%p1184_p2)
}
   0x8   :  { %s1188_s22 = scalar_lea.vmem %s39_s14, 4096  ;;  %p1193_p4 = scmp.lt.s32.totalorder %s39_s14, %s39_s14 }
   0x9   :  { %p1189_p3 = scmp.ne.s32.totalorder %s39_s14, %s1188_s22  ;;  %p1194_p5 = scmp.lt.s32.totalorder %s1188_s22, %s1188_s22 }
   0xb   :  { %p1195_p6 = por %p1194_p5, %p1193_p4 }
   0xd   :  { %p1196_p7 = pnand %p1195_p6, %p1189_p3 }
   0xf   :  { %1199 = shalt.err (!%p1196_p7)
}
  0x10   :  { %s1249_s23 = smov 128   ;;  %s1250_s24 = smov 8  }
  0x11   :  { %44 = dma.hbm_to_vmem [thread:$0]  %s1387_s3, 4096, %s39_s14, [#allocation5], %s1249_s23, %s1249_s23, %s1250_s24  }
  0x12   :  { %s1251_s27 = smov [#allocation2]   ;;  %s1200_s11 = scalar_lea.hbm %s1385_s1, 4096 }
  0x13   :  { %s24_s28 = sshll.u32 %s1251_s27, 4  ;;  %p1201_p8 = scmp.ne.s32.totalorder %s1385_s1, %s1200_s11  ;;  %s25_s28 = int_to_ptr.vmem [resolvable:$true] %s24_s28 }
  0x14   :  { %p1204_p9 = scmp.lt.u32.totalorder %s1200_s11, %s1385_s1 }
  0x16   :  { %p1206_p10 = pnand %p1204_p9, %p1201_p8 }
  0x18   :  { %1209 = shalt.err (!%p1206_p10)
}
  0x19   :  { %s1210_s17 = scalar_lea.vmem %s25_s28, 4096  ;;  %p1215_p12 = scmp.lt.s32.totalorder %s25_s28, %s25_s28 }
  0x1a   :  { %p1211_p11 = scmp.ne.s32.totalorder %s25_s28, %s1210_s17  ;;  %p1216_p13 = scmp.lt.s32.totalorder %s1210_s17, %s1210_s17 }
  0x1c   :  { %p1217_p0 = por %p1216_p13, %p1215_p12 }
  0x1e   :  { %p1218_p1 = pnand %p1217_p0, %p1211_p11 }
  0x20   :  { %1221 = shalt.err (!%p1218_p1)
}
  0x21   :  { %s1252_s3 = smov 256   ;;  %s1253_s14 = smov 16  }
  0x22   :  { %30 = dma.hbm_to_vmem [thread:$0]  %s1385_s1, 4096, %s25_s28, [#allocation3], %s1252_s3, %s1252_s3, %s1253_s14  }
  0x23   :  { %s1254_s20 = smov [#allocation6]   ;;  %s1222_s26 = scalar_lea.hbm %s1389_s5, 4096 }
  0x24   :  { %s52_s21 = sshll.u32 %s1254_s20, 4  ;;  %p1223_p2 = scmp.ne.s32.totalorder %s1389_s5, %s1222_s26  ;;  %s53_s21 = int_to_ptr.vmem [resolvable:$true] %s52_s21 }
  0x25   :  { %p1226_p3 = scmp.lt.u32.totalorder %s1222_s26, %s1389_s5 }
  0x27   :  { %p1228_p4 = pnand %p1226_p3, %p1223_p2 }
  0x29   :  { %1231 = shalt.err (!%p1228_p4)
}
  0x2a   :  { %s1232_s12 = scalar_lea.vmem %s53_s21, 4096  ;;  %p1237_p6 = scmp.lt.s32.totalorder %s53_s21, %s53_s21 }
  0x2b   :  { %p1233_p5 = scmp.ne.s32.totalorder %s53_s21, %s1232_s12  ;;  %p1238_p7 = scmp.lt.s32.totalorder %s1232_s12, %s1232_s12 }
  0x2d   :  { %p1239_p8 = por %p1238_p7, %p1237_p6 }
  0x2f   :  { %p1240_p9 = pnand %p1239_p8, %p1233_p5 }
  0x31   :  { %1243 = shalt.err (!%p1240_p9)
}
  0x32   :  { %58 = dma.hbm_to_vmem [thread:$0]  %s1389_s5, 4096, %s53_s21, [#allocation5], %s1249_s23, %s1249_s23, %s1250_s24  }
  0x33   :  { %1244 = dma.done.wait [#allocation3], 4096  }
  0x34   :  { %1245 = vsyncadd [#allocation3], 4294963200 }
  0x35   :  { %1246 = dma.done.wait [#allocation5], 8192  }
  0x36   :  { %1247 = vsyncadd [#allocation5], 4294959104  ;;  %v1255_v0 = vmov 0   ;;  %v1034_v1 = vld [vmem:[#allocation2 + $0x4] ss:$16 sps:$4 sm:$0xff]   ;;  %vm911_vm0 = vcmask 7168  }
  0x37   :  { %325 = vmatprep.mubr.bf16.mxu0 %v1255_v0  ;;  %366 = vmatprep.mubr.bf16.mxu1 %v1255_v0  ;;  %v1036_v2 = vld [vmem:[#allocation2 + $0xc] ss:$16 sps:$4 sm:$0xff]   ;;  %v1038_v3 = vld [vmem:[#allocation2] ss:$16 sps:$4 sm:$0xff]   ;;  %v1039_v4 = vld [vmem:[#allocation2 + $0x8] ss:$16 sps:$4 sm:$0xff]  }
  0x38   :  { %293 = vmatprep.subr.bf16.mxu0 %v1034_v1  ;;  %334 = vmatprep.subr.bf16.mxu1 %v1036_v2  ;;  %v1040_v5 = vld [vmem:[#allocation2 + $0x24] ss:$16 sps:$4 sm:$0xff]   ;;  %v1042_v6 = vld [vmem:[#allocation2 + $0x2c] ss:$16 sps:$4 sm:$0xff]   ;;  %v1044_v7 = vld [vmem:[#allocation2 + $0x20] ss:$16 sps:$4 sm:$0xff]  }
  0x39   :  { %294 = vmatpush1.bf16.msra.mxu0 %v1038_v3  ;;  %335 = vmatpush1.bf16.msra.mxu1 %v1039_v4  ;;  %v1045_v8 = vld [vmem:[#allocation2 + $0x28] ss:$16 sps:$4 sm:$0xff]   ;;  %v1046_v9 = vld [vmem:[#allocation2 + $0x44] ss:$16 sps:$4 sm:$0xff]   ;;  %v1048_v10 = vld [vmem:[#allocation2 + $0x4c] ss:$16 sps:$4 sm:$0xff]  }
  0x3a   :  { %295 = vmatprep.subr.bf16.mxu0 %v1040_v5  ;;  %336 = vmatprep.subr.bf16.mxu1 %v1042_v6  ;;  %v1050_v11 = vld [vmem:[#allocation2 + $0x40] ss:$16 sps:$4 sm:$0xff]   ;;  %v1051_v12 = vld [vmem:[#allocation2 + $0x48] ss:$16 sps:$4 sm:$0xff]   ;;  %v1052_v13 = vld [vmem:[#allocation2 + $0x64] ss:$16 sps:$4 sm:$0xff]  }
  0x3b   :  { %v1054_v14 = vld [vmem:[#allocation2 + $0x6c] ss:$16 sps:$4 sm:$0xff]   ;;  %v1056_v15 = vld [vmem:[#allocation2 + $0x60] ss:$16 sps:$4 sm:$0xff]   ;;  %v1057_v16 = vld [vmem:[#allocation2 + $0x68] ss:$16 sps:$4 sm:$0xff]  }
  0x3c   :  { %v1058_v17 = vld [vmem:[#allocation2 + $0x84] ss:$16 sps:$4 sm:$0xff]   ;;  %v1060_v18 = vld [vmem:[#allocation2 + $0x8c] ss:$16 sps:$4 sm:$0xff]   ;;  %v1062_v19 = vld [vmem:[#allocation2 + $0x80] ss:$16 sps:$4 sm:$0xff]  }
  0x3d   :  { %296 = vmatpush1.bf16.msra.mxu0 %v1044_v7  ;;  %337 = vmatpush1.bf16.msra.mxu1 %v1045_v8  ;;  %v1063_v20 = vld [vmem:[#allocation2 + $0x88] ss:$16 sps:$4 sm:$0xff]   ;;  %v1064_v21 = vld [vmem:[#allocation2 + $0xa4] ss:$16 sps:$4 sm:$0xff]   ;;  %v1066_v22 = vld [vmem:[#allocation2 + $0xac] ss:$16 sps:$4 sm:$0xff]  }
  0x3e   :  { %297 = vmatprep.subr.bf16.mxu0 %v1046_v9  ;;  %338 = vmatprep.subr.bf16.mxu1 %v1048_v10  ;;  %v1068_v23 = vld [vmem:[#allocation2 + $0xa0] ss:$16 sps:$4 sm:$0xff]   ;;  %v1069_v24 = vld [vmem:[#allocation2 + $0xa8] ss:$16 sps:$4 sm:$0xff]   ;;  %v1070_v25 = vld [vmem:[#allocation2 + $0xc4] ss:$16 sps:$4 sm:$0xff]  }
  0x3f   :  { %v1072_v26 = vld [vmem:[#allocation2 + $0xcc] ss:$16 sps:$4 sm:$0xff]   ;;  %v1074_v27 = vld [vmem:[#allocation2 + $0xc0] ss:$16 sps:$4 sm:$0xff]   ;;  %v1075_v28 = vld [vmem:[#allocation2 + $0xc8] ss:$16 sps:$4 sm:$0xff]  }
  0x40   :  { %v1076_v29 = vld [vmem:[#allocation2 + $0xe4] ss:$16 sps:$4 sm:$0xff]   ;;  %v1078_v30 = vld [vmem:[#allocation2 + $0xec] ss:$16 sps:$4 sm:$0xff]   ;;  %v1080_v31 = vld [vmem:[#allocation2 + $0xe0] ss:$16 sps:$4 sm:$0xff]  }
  0x41   :  { %298 = vmatpush1.bf16.msra.mxu0 %v1050_v11  ;;  %339 = vmatpush1.bf16.msra.mxu1 %v1051_v12  ;;  %v1081_v32 = vld [vmem:[#allocation2 + $0xe8] ss:$16 sps:$4 sm:$0xff]   ;;  %v77_v33 = vld [vmem:[%s1384_s0] sm:$0xff]  ;;  %v1090_v39 = vld [vmem:[#allocation4 + $0x14] ss:$8 sps:$4 sm:$0xff]   ;;  %vm921_vm1 = vcmask 15360  }
  0x42   :  { %299 = vmatprep.subr.bf16.mxu0 %v1052_v13  ;;  %340 = vmatprep.subr.bf16.mxu1 %v1054_v14  ;;  %v1084_v34 = vld [vmem:[#allocation4 + $0x4] ss:$8 sps:$4 sm:$0xff]   ;;  %v78_v36 = vpack.c.bf16 %v77_v33, %v77_v33  ;;  %v1082_v37 = vld [vmem:[#allocation4] ss:$8 sps:$4 sm:$0xff]   ;;  %v1093_v40 = vld [vmem:[#allocation6 + $0x14] ss:$8 sps:$4 sm:$0xff]  }
  0x43   :  { %v1087_v35 = vld [vmem:[#allocation6 + $0x4] ss:$8 sps:$4 sm:$0xff]   ;;  %v1085_v38 = vld [vmem:[#allocation6] ss:$8 sps:$4 sm:$0xff]   ;;  %v1088_v41 = vld [vmem:[#allocation4 + $0x10] ss:$8 sps:$4 sm:$0xff]  }
  0x44   :  { %v1091_v42 = vld [vmem:[#allocation6 + $0x10] ss:$8 sps:$4 sm:$0xff]   ;;  %v1096_v43 = vld [vmem:[#allocation4 + $0x24] ss:$8 sps:$4 sm:$0xff]   ;;  %v1094_v45 = vld [vmem:[#allocation4 + $0x20] ss:$8 sps:$4 sm:$0xff]  }
  0x45   :  { %300 = vmatpush1.bf16.msra.mxu0 %v1056_v15  ;;  %341 = vmatpush1.bf16.msra.mxu1 %v1057_v16  ;;  %v1099_v44 = vld [vmem:[#allocation6 + $0x24] ss:$8 sps:$4 sm:$0xff]   ;;  %v1097_v46 = vld [vmem:[#allocation6 + $0x20] ss:$8 sps:$4 sm:$0xff]   ;;  %v1102_v47 = vld [vmem:[#allocation4 + $0x34] ss:$8 sps:$4 sm:$0xff]  }
  0x46   :  { %301 = vmatprep.subr.bf16.mxu0 %v1058_v17  ;;  %342 = vmatprep.subr.bf16.mxu1 %v1060_v18  ;;  %v1105_v48 = vld [vmem:[#allocation6 + $0x34] ss:$8 sps:$4 sm:$0xff]   ;;  %v1100_v49 = vld [vmem:[#allocation4 + $0x30] ss:$8 sps:$4 sm:$0xff]   ;;  %v1108_v51 = vld [vmem:[#allocation4 + $0x44] ss:$8 sps:$4 sm:$0xff]  }
  0x47   :  { %v1103_v50 = vld [vmem:[#allocation6 + $0x30] ss:$8 sps:$4 sm:$0xff]   ;;  %v1111_v52 = vld [vmem:[#allocation6 + $0x44] ss:$8 sps:$4 sm:$0xff]   ;;  %v1106_v53 = vld [vmem:[#allocation4 + $0x40] ss:$8 sps:$4 sm:$0xff]  }
  0x48   :  { %v1109_v54 = vld [vmem:[#allocation6 + $0x40] ss:$8 sps:$4 sm:$0xff]   ;;  %v1114_v55 = vld [vmem:[#allocation4 + $0x54] ss:$8 sps:$4 sm:$0xff]   ;;  %v1112_v57 = vld [vmem:[#allocation4 + $0x50] ss:$8 sps:$4 sm:$0xff]  }
  0x49   :  { %302 = vmatpush1.bf16.msra.mxu0 %v1062_v19  ;;  %343 = vmatpush1.bf16.msra.mxu1 %v1063_v20  ;;  %v1117_v56 = vld [vmem:[#allocation6 + $0x54] ss:$8 sps:$4 sm:$0xff]   ;;  %v1115_v58 = vld [vmem:[#allocation6 + $0x50] ss:$8 sps:$4 sm:$0xff]   ;;  %v1120_v59 = vld [vmem:[#allocation4 + $0x64] ss:$8 sps:$4 sm:$0xff]  }
  0x4a   :  { %303 = vmatprep.subr.bf16.mxu0 %v1064_v21  ;;  %344 = vmatprep.subr.bf16.mxu1 %v1066_v22  ;;  %v1123_v60 = vld [vmem:[#allocation6 + $0x64] ss:$8 sps:$4 sm:$0xff]   ;;  %v1118_v61 = vld [vmem:[#allocation4 + $0x60] ss:$8 sps:$4 sm:$0xff]   ;;  %v1126_v63 = vld [vmem:[#allocation4 + $0x74] ss:$8 sps:$4 sm:$0xff]  }
  0x4b   :  { %v1121_v62 = vld [vmem:[#allocation6 + $0x60] ss:$8 sps:$4 sm:$0xff]   ;;  %v1129_v0 = vld [vmem:[#allocation6 + $0x74] ss:$8 sps:$4 sm:$0xff]   ;;  %v1124_v1 = vld [vmem:[#allocation4 + $0x70] ss:$8 sps:$4 sm:$0xff]  }
  0x4c   :  { %v1127_v2 = vld [vmem:[#allocation6 + $0x70] ss:$8 sps:$4 sm:$0xff]   ;;  %v1132_v3 = vld [vmem:[#allocation4 + $0x84] ss:$8 sps:$4 sm:$0xff]   ;;  %v1130_v5 = vld [vmem:[#allocation4 + $0x80] ss:$8 sps:$4 sm:$0xff]  }
  0x4d   :  { %304 = vmatpush1.bf16.msra.mxu0 %v1068_v23  ;;  %345 = vmatpush1.bf16.msra.mxu1 %v1069_v24  ;;  %v1135_v4 = vld [vmem:[#allocation6 + $0x84] ss:$8 sps:$4 sm:$0xff]   ;;  %v1133_v6 = vld [vmem:[#allocation6 + $0x80] ss:$8 sps:$4 sm:$0xff]   ;;  %v1138_v7 = vld [vmem:[#allocation4 + $0x94] ss:$8 sps:$4 sm:$0xff]  }
  0x4e   :  { %305 = vmatprep.subr.bf16.mxu0 %v1070_v25  ;;  %346 = vmatprep.subr.bf16.mxu1 %v1072_v26  ;;  %v1141_v8 = vld [vmem:[#allocation6 + $0x94] ss:$8 sps:$4 sm:$0xff]   ;;  %v1136_v9 = vld [vmem:[#allocation4 + $0x90] ss:$8 sps:$4 sm:$0xff]   ;;  %v1144_v11 = vld [vmem:[#allocation4 + $0xa4] ss:$8 sps:$4 sm:$0xff]  }
  0x4f   :  { %v1139_v10 = vld [vmem:[#allocation6 + $0x90] ss:$8 sps:$4 sm:$0xff]   ;;  %v1147_v12 = vld [vmem:[#allocation6 + $0xa4] ss:$8 sps:$4 sm:$0xff]   ;;  %v1142_v13 = vld [vmem:[#allocation4 + $0xa0] ss:$8 sps:$4 sm:$0xff]  }
  0x50   :  { %v1145_v14 = vld [vmem:[#allocation6 + $0xa0] ss:$8 sps:$4 sm:$0xff]   ;;  %v1150_v15 = vld [vmem:[#allocation4 + $0xb4] ss:$8 sps:$4 sm:$0xff]   ;;  %v1148_v17 = vld [vmem:[#allocation4 + $0xb0] ss:$8 sps:$4 sm:$0xff]  }
  0x51   :  { %306 = vmatpush1.bf16.msra.mxu0 %v1074_v27  ;;  %347 = vmatpush1.bf16.msra.mxu1 %v1075_v28  ;;  %v1153_v16 = vld [vmem:[#allocation6 + $0xb4] ss:$8 sps:$4 sm:$0xff]   ;;  %v1151_v18 = vld [vmem:[#allocation6 + $0xb0] ss:$8 sps:$4 sm:$0xff]   ;;  %v1156_v19 = vld [vmem:[#allocation4 + $0xc4] ss:$8 sps:$4 sm:$0xff]  }
  0x52   :  { %307 = vmatprep.subr.bf16.mxu0 %v1076_v29  ;;  %348 = vmatprep.subr.bf16.mxu1 %v1078_v30  ;;  %v1159_v20 = vld [vmem:[#allocation6 + $0xc4] ss:$8 sps:$4 sm:$0xff]   ;;  %v1154_v21 = vld [vmem:[#allocation4 + $0xc0] ss:$8 sps:$4 sm:$0xff]   ;;  %v1162_v23 = vld [vmem:[#allocation4 + $0xd4] ss:$8 sps:$4 sm:$0xff]  }
  0x53   :  { %v1157_v22 = vld [vmem:[#allocation6 + $0xc0] ss:$8 sps:$4 sm:$0xff]   ;;  %v1165_v24 = vld [vmem:[#allocation6 + $0xd4] ss:$8 sps:$4 sm:$0xff]   ;;  %v1160_v25 = vld [vmem:[#allocation4 + $0xd0] ss:$8 sps:$4 sm:$0xff]  }
  0x54   :  { %v1163_v26 = vld [vmem:[#allocation6 + $0xd0] ss:$8 sps:$4 sm:$0xff]   ;;  %v1168_v27 = vld [vmem:[#allocation4 + $0xe4] ss:$8 sps:$4 sm:$0xff]   ;;  %v1166_v29 = vld [vmem:[#allocation4 + $0xe0] ss:$8 sps:$4 sm:$0xff]  }
  0x55   :  { %308 = vmatpush1.bf16.msra.mxu0 %v1080_v31  ;;  %349 = vmatpush1.bf16.msra.mxu1 %v1081_v32  ;;  %v1171_v28 = vld [vmem:[#allocation6 + $0xe4] ss:$8 sps:$4 sm:$0xff]   ;;  %v1169_v30 = vld [vmem:[#allocation6 + $0xe0] ss:$8 sps:$4 sm:$0xff]   ;;  %v1174_v31 = vld [vmem:[#allocation4 + $0xf4] ss:$8 sps:$4 sm:$0xff]  }
  0x56   :  { %587 = vmatprep.subr.bf16.mxu0 %v1084_v34  ;;  %834 = vmatprep.subr.bf16.mxu1 %v1087_v35  ;;  %v1177_v32 = vld [vmem:[#allocation6 + $0xf4] ss:$8 sps:$4 sm:$0xff]   ;;  %v1172_v33 = vld [vmem:[#allocation4 + $0xf0] ss:$8 sps:$4 sm:$0xff]   ;;  %v113_v35 = vlaneseq }
  0x57   :  { %v1175_v34 = vld [vmem:[#allocation6 + $0xf0] ss:$8 sps:$4 sm:$0xff]  }
  0x58   :  { %326 = vmatmul.mubr.bf16.vlgmr.msra.gmra.mrb[0].mxu0 %v78_v36  ;;  %367 = vmatmul.mubr.bf16.vlgmr.msra.gmra.mrb[0].mxu1 %v78_v36  ;;  %v114_v36 = vshrl.u32 %v113_v35, 7 }
  0x59   :  { %588 = vmatpush1.bf16.msra.mxu0 %v1082_v37  ;;  %835 = vmatpush1.bf16.msra.mxu1 %v1085_v38 }
  0x5a   :  { %589 = vmatprep.subr.bf16.mxu0 %v1090_v39  ;;  %836 = vmatprep.subr.bf16.mxu1 %v1093_v40  ;;  %v1356_v37 = vsub.s32 0, %v114_v36  ;;  %v123_v38 = vsub.s32 2, %v114_v36  ;;  %v111_v39 = vld [vmem:[%s1386_s2] sm:$0xf]  ;;  %v119_v40 = vsub.s32 1, %v114_v36 }
  0x5d   :  { %590 = vmatpush1.bf16.msra.mxu0 %v1088_v41  ;;  %837 = vmatpush1.bf16.msra.mxu1 %v1091_v42  ;;  %v127_v41 = vsub.s32 3, %v114_v36  ;;  %v116_v42 = vrot.slane %v111_v39, %v1356_v37 }
  0x5e   :  { %591 = vmatprep.subr.bf16.mxu0 %v1096_v43  ;;  %838 = vmatprep.subr.bf16.mxu1 %v1099_v44  ;;  %v124_v43 = vrot.slane %v111_v39, %v123_v38  ;;  %v120_v44 = vrot.slane %v111_v39, %v119_v40 }
  0x61   :  { %592 = vmatpush1.bf16.msra.mxu0 %v1094_v45  ;;  %839 = vmatpush1.bf16.msra.mxu1 %v1097_v46  ;;  %v128_v45 = vrot.slane %v111_v39, %v127_v41 }
  0x62   :  { %593 = vmatprep.subr.bf16.mxu0 %v1102_v47  ;;  %840 = vmatprep.subr.bf16.mxu1 %v1105_v48 }
  0x65   :  { %594 = vmatpush1.bf16.msra.mxu0 %v1100_v49  ;;  %841 = vmatpush1.bf16.msra.mxu1 %v1103_v50 }
  0x66   :  { %595 = vmatprep.subr.bf16.mxu0 %v1108_v51  ;;  %842 = vmatprep.subr.bf16.mxu1 %v1111_v52 }
  0x69   :  { %596 = vmatpush1.bf16.msra.mxu0 %v1106_v53  ;;  %843 = vmatpush1.bf16.msra.mxu1 %v1109_v54 }
  0x6a   :  { %597 = vmatprep.subr.bf16.mxu0 %v1114_v55  ;;  %844 = vmatprep.subr.bf16.mxu1 %v1117_v56 }
  0x6d   :  { %598 = vmatpush1.bf16.msra.mxu0 %v1112_v57  ;;  %845 = vmatpush1.bf16.msra.mxu1 %v1115_v58 }
  0x6e   :  { %599 = vmatprep.subr.bf16.mxu0 %v1120_v59  ;;  %846 = vmatprep.subr.bf16.mxu1 %v1123_v60 }
  0x71   :  { %600 = vmatpush1.bf16.msra.mxu0 %v1118_v61  ;;  %847 = vmatpush1.bf16.msra.mxu1 %v1121_v62 }
  0x72   :  { %601 = vmatprep.subr.bf16.mxu0 %v1126_v63  ;;  %848 = vmatprep.subr.bf16.mxu1 %v1129_v0 }
  0x75   :  { %602 = vmatpush1.bf16.msra.mxu0 %v1124_v1  ;;  %849 = vmatpush1.bf16.msra.mxu1 %v1127_v2  ;;  %v415_v2 = vld [vmem:[%s1388_s4] sm:$0x3] }
  0x76   :  { %603 = vmatprep.subr.bf16.mxu0 %v1132_v3  ;;  %850 = vmatprep.subr.bf16.mxu1 %v1135_v4  ;;  %v662_v3 = vld [vmem:[%s1390_s6] sm:$0x3]  ;;  %v420_v4 = vrot.slane %v415_v2, %v1356_v37 }
  0x79   :  { %604 = vmatpush1.bf16.msra.mxu0 %v1130_v5  ;;  %851 = vmatpush1.bf16.msra.mxu1 %v1133_v6  ;;  %v667_v5 = vrot.slane %v662_v3, %v1356_v37  ;;  %v894_v6 = vld [vmem:[%s1392_s8] sm:$0x3] }
  0x7a   :  { %605 = vmatprep.subr.bf16.mxu0 %v1138_v7  ;;  %852 = vmatprep.subr.bf16.mxu1 %v1141_v8  ;;  %v424_v7 = vrot.slane %v415_v2, %v119_v40  ;;  %v671_v8 = vrot.slane %v662_v3, %v119_v40 }
  0x7d   :  { %606 = vmatpush1.bf16.msra.mxu0 %v1136_v9  ;;  %853 = vmatpush1.bf16.msra.mxu1 %v1139_v10  ;;  %v877_v9 = vld [vmem:[%s1391_s7] sm:$0x3] }
  0x7e   :  { %607 = vmatprep.subr.bf16.mxu0 %v1144_v11  ;;  %854 = vmatprep.subr.bf16.mxu1 %v1147_v12 }
  0x81   :  { %608 = vmatpush1.bf16.msra.mxu0 %v1142_v13  ;;  %855 = vmatpush1.bf16.msra.mxu1 %v1145_v14  ;;  %v899_v14 = vrot.slane %v894_v6, %v1356_v37 }
  0x82   :  { %609 = vmatprep.subr.bf16.mxu0 %v1150_v15  ;;  %856 = vmatprep.subr.bf16.mxu1 %v1153_v16 }
  0x85   :  { %610 = vmatpush1.bf16.msra.mxu0 %v1148_v17  ;;  %857 = vmatpush1.bf16.msra.mxu1 %v1151_v18  ;;  %v882_v17 = vrot.slane %v877_v9, %v1356_v37  ;;  %v1025_v37 = vld [vmem:[%s1393_s9] ss:$0 sm:$0xff] }
  0x86   :  { %611 = vmatprep.subr.bf16.mxu0 %v1156_v19  ;;  %858 = vmatprep.subr.bf16.mxu1 %v1159_v20  ;;  %v903_v20 = vrot.slane %v894_v6, %v119_v40 }
  0x89   :  { %612 = vmatpush1.bf16.msra.mxu0 %v1154_v21  ;;  %859 = vmatpush1.bf16.msra.mxu1 %v1157_v22 }
  0x8a   :  { %613 = vmatprep.subr.bf16.mxu0 %v1162_v23  ;;  %860 = vmatprep.subr.bf16.mxu1 %v1165_v24  ;;  %v886_v23 = vrot.slane %v877_v9, %v119_v40 }
  0x8d   :  { %614 = vmatpush1.bf16.msra.mxu0 %v1160_v25  ;;  %861 = vmatpush1.bf16.msra.mxu1 %v1163_v26 }
  0x8e   :  { %615 = vmatprep.subr.bf16.mxu0 %v1168_v27  ;;  %862 = vmatprep.subr.bf16.mxu1 %v1171_v28 }
  0x91   :  { %616 = vmatpush1.bf16.msra.mxu0 %v1166_v29  ;;  %863 = vmatpush1.bf16.msra.mxu1 %v1169_v30 }
  0x92   :  { %617 = vmatprep.subr.bf16.mxu0 %v1174_v31  ;;  %864 = vmatprep.subr.bf16.mxu1 %v1177_v32 }
  0x95   :  { %618 = vmatpush1.bf16.msra.mxu0 %v1172_v33  ;;  %865 = vmatpush1.bf16.msra.mxu1 %v1175_v34 }
 0x12b   :  { %v327_v46 = vpop.f32.mrb[0].mxu0  ;;  %v368_v47 = vpop.f32.mrb[0].mxu1 }
 0x12c   :  { %v328_v48 = vadd.f32 %v327_v46, %v116_v42  ;;  %v369_v49 = vadd.f32 %v368_v47, %v124_v43  ;;  %v329_v50 = vpop.f32.mrb[1].mxu0  ;;  %v370_v51 = vpop.f32.mrb[1].mxu1 }
 0x12d   :  { %v330_v52 = vadd.f32 %v329_v50, %v120_v44  ;;  %v371_v53 = vadd.f32 %v370_v51, %v128_v45  ;;  %v331_v54 = vpop.f32.mrb[2].mxu0  ;;  %v372_v55 = vpop.f32.mrb[2].mxu1 }
 0x12e   :  { %v375_v56 = vmax.f32 %v328_v48, 0.0  ;;  %v377_v57 = vmax.f32 %v369_v49, 0.0  ;;  %v332_v58 = vpop.f32.mrb[3].mxu0  ;;  %v373_v59 = vpop.f32.mrb[3].mxu1 }
 0x12f   :  { %v376_v60 = vmax.f32 %v330_v52, 0.0  ;;  %v378_v61 = vmax.f32 %v371_v53, 0.0 }
 0x130   :  { %v381_v62 = vpack.c.bf16 %v377_v57, %v377_v57  ;;  %v379_v1 = vpack.c.bf16 %v375_v56, %v375_v56 }
 0x131   :  { %v380_v63 = vpack.c.bf16 %v376_v60, %v376_v60  ;;  %v382_v0 = vpack.c.bf16 %v378_v61, %v378_v61 }
 0x133   :  { %619 = vmatprep.mubr.bf16.mxu0 %v380_v63  ;;  %866 = vmatprep.mubr.bf16.mxu1 %v382_v0 }
 0x134   :  { %620 = vmatmul.mubr.bf16.vlgmr.msra.gmra.mrb[4].mxu0 %v379_v1  ;;  %867 = vmatmul.mubr.bf16.vlgmr.msra.gmra.mrb[4].mxu1 %v381_v62 }
 0x207   :  { %v621_v10 = vpop.f32.mrb[4].mxu0  ;;  %v868_v11 = vpop.f32.mrb[4].mxu1 }
 0x208   :  { %v622_v12 = vadd.f32 %v621_v10, %v420_v4  ;;  %v869_v13 = vadd.f32 %v868_v11, %v667_v5  ;;  %v623_v15 = vpop.f32.mrb[5].mxu0  ;;  %v870_v16 = vpop.f32.mrb[5].mxu1 }
 0x209   :  { %v624_v18 = vadd.f32 %v623_v15, %v424_v7  ;;  %v871_v19 = vadd.f32 %v870_v16, %v671_v8  ;;  %v625_v21 = vpop.f32.mrb[6].mxu0  ;;  %v872_v22 = vpop.f32.mrb[6].mxu1 }
 0x20a   :  { %v628_v24 = vmax.f32 %v622_v12, 0.0  ;;  %v875_v25 = vmax.f32 %v869_v13, 0.0  ;;  %v626_v26 = vpop.f32.mrb[7].mxu0  ;;  %v873_v27 = vpop.f32.mrb[7].mxu1 }
 0x20b   :  { %v629_v28 = vmax.f32 %v624_v18, 0.0  ;;  %v876_v29 = vmax.f32 %v871_v19, 0.0 }
 0x20c   :  { %v906_v30 = vmul.f32 %v899_v14, %v875_v25  ;;  %v889_v31 = vmul.f32 %v882_v17, %v628_v24 }
 0x20d   :  { %v907_v32 = vmul.f32 %v903_v20, %v876_v29  ;;  %v890_v33 = vmul.f32 %v886_v23, %v629_v28 }
 0x20f   :  { %v891_v34 = vadd.f32 %v890_v33, %v889_v31  ;;  %v908_v35 = vadd.f32 %v907_v32, %v906_v30 }
 0x211   :  { %892 = vadd.xlane.f32.xlu0 %v891_v34 }
 0x215   :  { %909 = vadd.xlane.f32.xlu0 %v908_v35 }
 0x29e   :  { %v893_v36 = vpop.xlane.xlu0 %892 }
 0x2a2   :  { %v910_v38 = vpop.xlane.xlu0 %909 }
 0x2a3   :  { %v912_v39 = vsel %vm911_vm0, %v893_v36, %v910_v38 }
 0x2a4   :  { %v920_v40 = vadd.f32 %v1025_v37, %v912_v39 }
 0x2a6   :  { %922 = vst.msk [vmem:[%s1394_s10] sm:$0xff] %vm921_vm1, %v920_v40 }
 0x2a7   :  { %927 = vsyncpa [#allocation3], 1 }
 0x2a8   :  { %928 = vsyncpa [#allocation5], 1 }

</bundles_post_ra>
